<compile_context>
chip_gen: v7x
topology: tpu7x:2x2x1
jax: 0.10.0
libtpu: 0.0.40
codegen_flags: <defaults>
</compile_context>

<pallas_src>
import jax
import jax.numpy as jnp
from jax.experimental import pallas as pl
from jax.experimental.pallas import tpu as pltpu


# ------------------------------- Pallas kernel -------------------------------


def _make_basic_block_kernel(H, W, C):
  """Fused conv1+BN+ReLU -> conv2+BN -> +residual kernel for one image."""
  HW = H * W
  PAD = W + 1  # flat halo wide enough to absorb any 3x3 tap shift

  def kernel(x_ref, w1_ref, w2_ref, o_ref):
    # x_ref : (1, C, HW)      activations, lane-dense (HW on lanes)
    # w*_ref: (C, 9*C + 1)    BN-folded conv weights, bias in last column
    # o_ref : (1, C, HW)
    x = x_ref[0]                                           # (C, HW) f32

    # Column index of every flattened spatial position, for the horizontal
    # wrap-around masks of the dx = +/-1 taps.  Vertical out-of-range taps
    # land in the zero halo, so they need no mask.
    col = jax.lax.broadcasted_iota(jnp.int32, (1, HW), 1) % W
    left_ok = jnp.where(col >= 1, 1.0, 0.0)                # valid for dx = -1
    right_ok = jnp.where(col <= W - 2, 1.0, 0.0)           # valid for dx = +1
    ones_row = jnp.ones((1, HW), jnp.float32)              # carries the bias
    halo = jnp.zeros((C, PAD), jnp.float32)

    def im2col(v):
      # v: (C, HW) -> (9*C + 1, HW).  Row block t = 3*(dy+1) + (dx+1) holds v
      # shifted by (dy, dx); shifts are pure lane-axis slices of the flat,
      # zero-haloed row (no (8,128)-crossing strided slices, no HBM pad).
      vp = jnp.concatenate([halo, v, halo], axis=1)        # (C, HW + 2*PAD)
      pieces = []
      for dy in (-1, 0, 1):
        for dx in (-1, 0, 1):
          start = PAD + dy * W + dx
          piece = vp[:, start:start + HW]                  # (C, HW)
          if dx == -1:
            piece = piece * left_ok
          elif dx == 1:
            piece = piece * right_ok
          pieces.append(piece)
      pieces.append(ones_row)
      return jnp.concatenate(pieces, axis=0)               # (9*C + 1, HW)

    # conv1 + BN + ReLU : one MXU matmul, lane-dense (C, HW) result.
    h1 = jnp.dot(w1_ref[...], im2col(x), preferred_element_type=jnp.float32)
    h1 = jnp.maximum(h1, 0.0)

    # conv2 + BN + residual add (no ReLU after the add).  The residual is the
    # kernel's own input, so it never takes a second HBM read.
    h2 = jnp.dot(w2_ref[...], im2col(h1), preferred_element_type=jnp.float32)
    o_ref[0] = (h2 + x).astype(o_ref.dtype)

  return kernel


# ------------------------------- host wrappers --------------------------------


def _fold_bn_into_matmul_weight(w_oihw, gamma, beta, mean, var, eps=1e-5):
  """Fold inference BatchNorm into the conv weight and lay it out as the
  (Cout, 9*Cin + 1) matrix used by the kernel (bias in the last column)."""
  cout, cin, kh, kw = w_oihw.shape
  scale = gamma / jnp.sqrt(var + eps)                      # (Cout,)
  w_scaled = w_oihw * scale[:, None, None, None]           # (Cout,Cin,Kh,Kw)
  # Column order must match the kernel's tap enumeration: (ky, kx, ci).
  w_mat = jnp.transpose(w_scaled, (0, 2, 3, 1)).reshape(cout, kh * kw * cin)
  bias = (beta - mean * scale)[:, None]                    # (Cout, 1)
  return jnp.concatenate([w_mat, bias], axis=1).astype(jnp.float32)


def basic_block_forward(x_nchw, params):
  """BasicBlock forward (stride=1, dilation=1, downsample=None).

  NCHW in / NCHW out; internally the spatial dims are flattened (a free
  reshape, no transpose) so H*W rides the TPU lane dimension.
  """
  n, c, h, w = x_nchw.shape
  hw = h * w
  x_flat = x_nchw.reshape(n, c, hw).astype(jnp.float32)

  w1 = _fold_bn_into_matmul_weight(params["conv1_w"], params["bn1_gamma"],
                                   params["bn1_beta"], params["bn1_mean"],
                                   params["bn1_var"])
  w2 = _fold_bn_into_matmul_weight(params["conv2_w"], params["bn2_gamma"],
                                   params["bn2_beta"], params["bn2_mean"],
                                   params["bn2_var"])

  kernel = _make_basic_block_kernel(h, w, c)

  act_spec = pl.BlockSpec((1, c, hw), lambda i: (i, 0, 0))
  w_spec = pl.BlockSpec((c, 9 * c + 1), lambda i: (0, 0))

  out_flat = pl.pallas_call(
      kernel,
      out_shape=jax.ShapeDtypeStruct((n, c, hw), jnp.float32),
      grid_spec=pltpu.PrefetchScalarGridSpec(
          num_scalar_prefetch=0,
          grid=(n,),                       # one image per step
          in_specs=[act_spec, w_spec, w_spec],
          out_specs=act_spec,
      ),
      compiler_params=pltpu.CompilerParams(
          dimension_semantics=("parallel",)),  # one image per TC on v7x
  )(x_flat, w1, w2)

  return out_flat.reshape(n, c, h, w)


# ----------------------------- pure-JAX reference ------------------------------


def _reference_forward(x_nchw, params, eps=1e-5):
  def convbn(x, w, g, b, m, v):
    y = jax.lax.conv_general_dilated(
        x, w, window_strides=(1, 1), padding=((1, 1), (1, 1)),
        dimension_numbers=("NCHW", "OIHW", "NCHW"))
    scale = g / jnp.sqrt(v + eps)
    return y * scale[None, :, None, None] + (b - m * scale)[None, :, None, None]

  out = convbn(x_nchw, params["conv1_w"], params["bn1_gamma"],
               params["bn1_beta"], params["bn1_mean"], params["bn1_var"])
  out = jnp.maximum(out, 0.0)
  out = convbn(out, params["conv2_w"], params["bn2_gamma"],
               params["bn2_beta"], params["bn2_mean"], params["bn2_var"])
  return out + x_nchw


# ------------------------------------ main --------------------------------------


if __name__ == "__main__":
  N, C, H, W = 2, 4, 16, 16          # inplanes = planes = 4
  key = jax.random.PRNGKey(0)
  keys = jax.random.split(key, 8)

  x = jax.random.normal(keys[0], (N, C, H, W), jnp.float32)

  params = {
      "conv1_w": 0.1 * jax.random.normal(keys[1], (C, C, 3, 3), jnp.float32),
      "bn1_gamma": 1.0 + 0.05 * jax.random.normal(keys[2], (C,), jnp.float32),
      "bn1_beta": 0.05 * jax.random.normal(keys[3], (C,), jnp.float32),
      "bn1_mean": 0.05 * jax.random.normal(keys[4], (C,), jnp.float32),
      "bn1_var": jnp.abs(1.0 + 0.05 * jax.random.normal(keys[5], (C,),
                                                        jnp.float32)),
      "conv2_w": 0.1 * jax.random.normal(keys[6], (C, C, 3, 3), jnp.float32),
      "bn2_gamma": jnp.ones((C,), jnp.float32),
      "bn2_beta": jnp.zeros((C,), jnp.float32),
      "bn2_mean": 0.05 * jax.random.normal(keys[7], (C,), jnp.float32),
      "bn2_var": jnp.ones((C,), jnp.float32),
  }

  out = jax.block_until_ready(basic_block_forward(x, params))
  ref = jax.block_until_ready(_reference_forward(x, params))

  assert out.shape == (N, C, H, W), out.shape
  max_err = float(jnp.max(jnp.abs(out - ref)))
  assert jnp.allclose(out, ref, atol=2e-4, rtol=2e-4), max_err
  print("KERNEL_OK")
</pallas_src>

<mosaic_0001>
module attributes {stable_mosaic.version = 11 : i64} {
  func.func @kernel(%arg0: i32, %arg1: memref<1x4x256xf32, #tpu.memory_space<vmem>>, %arg2: memref<4x37xf32, #tpu.memory_space<vmem>>, %arg3: memref<4x37xf32, #tpu.memory_space<vmem>>, %arg4: memref<1x4x256xf32, #tpu.memory_space<vmem>>) attributes {dimension_semantics = [#tpu.dimension_semantics<parallel>], iteration_bounds = array<i64: 2>, scalar_prefetch = 0 : i64, scratch_operands = 0 : i64, tpu.core_type = #tpu.core_type<tc>, window_params = [{transform_indices = @transform_0, window_bounds = array<i64: 1, 4, 256>}, {pipeline_mode = #tpu.pipeline_mode<synchronous>, transform_indices = @transform_1, window_bounds = array<i64: 4, 37>}, {pipeline_mode = #tpu.pipeline_mode<synchronous>, transform_indices = @transform_2, window_bounds = array<i64: 4, 37>}, {transform_indices = @transform_3, window_bounds = array<i64: 1, 4, 256>}]} {
    %c0 = arith.constant 0 : index
    %c0_0 = arith.constant 0 : index
    %c0_1 = arith.constant 0 : index
    %0 = vector.load %arg1[%c0, %c0_0, %c0_1] : memref<1x4x256xf32, #tpu.memory_space<vmem>>, vector<1x4x256xf32>
    %1 = vector.shape_cast %0 : vector<1x4x256xf32> to vector<4x256xf32>
    %2 = tpu.iota {dimensions = array<i32: 1>} : vector<1x256xi32>
    %c16_i32 = arith.constant 16 : i32
    %c0_i32 = arith.constant 0 : i32
    %3 = arith.cmpi eq, %c16_i32, %c0_i32 : i32
    %c1_i32 = arith.constant 1 : i32
    %4 = arith.select %3, %c1_i32, %c16_i32 : i32
    %5 = vector.broadcast %4 : i32 to vector<1x256xi32>
    %6 = arith.remsi %2, %5 : vector<1x256xi32>
    %c0_i32_2 = arith.constant 0 : i32
    %7 = vector.broadcast %c0_i32_2 : i32 to vector<1x256xi32>
    %8 = arith.cmpi ne, %6, %7 : vector<1x256xi32>
    %c0_i32_3 = arith.constant 0 : i32
    %9 = vector.broadcast %c0_i32_3 : i32 to vector<1x256xi32>
    %10 = arith.cmpi slt, %6, %9 : vector<1x256xi32>
    %c0_i32_4 = arith.constant 0 : i32
    %11 = arith.cmpi slt, %4, %c0_i32_4 : i32
    %12 = vector.broadcast %11 : i1 to vector<1x256xi1>
    %13 = vector.broadcast %12 : vector<1x256xi1> to vector<1x256xi1>
    %14 = arith.xori %10, %13 : vector<1x256xi1>
    %15 = arith.andi %14, %8 : vector<1x256xi1>
    %16 = vector.broadcast %4 : i32 to vector<1x256xi32>
    %17 = arith.addi %6, %16 : vector<1x256xi32>
    %18 = arith.select %15, %17, %6 : vector<1x256xi1>, vector<1x256xi32>
    %c1_i32_5 = arith.constant 1 : i32
    %19 = vector.broadcast %c1_i32_5 : i32 to vector<1x256xi32>
    %20 = arith.cmpi sge, %18, %19 : vector<1x256xi32>
    %cst = arith.constant 1.000000e+00 : f32
    %cst_6 = arith.constant 0.000000e+00 : f32
    %21 = vector.broadcast %cst : f32 to vector<1x256xf32>
    %22 = vector.broadcast %cst_6 : f32 to vector<1x256xf32>
    %23 = arith.select %20, %21, %22 : vector<1x256xi1>, vector<1x256xf32>
    %c14_i32 = arith.constant 14 : i32
    %24 = vector.broadcast %c14_i32 : i32 to vector<1x256xi32>
    %25 = arith.cmpi sle, %18, %24 : vector<1x256xi32>
    %cst_7 = arith.constant 1.000000e+00 : f32
    %cst_8 = arith.constant 0.000000e+00 : f32
    %26 = vector.broadcast %cst_7 : f32 to vector<1x256xf32>
    %27 = vector.broadcast %cst_8 : f32 to vector<1x256xf32>
    %28 = arith.select %25, %26, %27 : vector<1x256xi1>, vector<1x256xf32>
    %cst_9 = arith.constant 1.000000e+00 : f32
    %29 = vector.broadcast %cst_9 : f32 to vector<1x256xf32>
    %cst_10 = arith.constant 0.000000e+00 : f32
    %30 = vector.broadcast %cst_10 : f32 to vector<4x17xf32>
    %c0_11 = arith.constant 0 : index
    %c0_12 = arith.constant 0 : index
    %31 = vector.load %arg2[%c0_11, %c0_12] : memref<4x37xf32, #tpu.memory_space<vmem>>, vector<4x37xf32>
    %32 = tpu.concatenate %30, %1, %30 in 1 : vector<4x17xf32>, vector<4x256xf32>, vector<4x17xf32> -> vector<4x290xf32>
    %33 = vector.extract_strided_slice %32 {offsets = [0, 0], sizes = [4, 256], strides = [1, 1]} : vector<4x290xf32> to vector<4x256xf32>
    %34 = vector.broadcast %23 : vector<1x256xf32> to vector<4x256xf32>
    %35 = arith.mulf %33, %34 : vector<4x256xf32>
    %36 = vector.extract_strided_slice %32 {offsets = [0, 1], sizes = [4, 256], strides = [1, 1]} : vector<4x290xf32> to vector<4x256xf32>
    %37 = vector.extract_strided_slice %32 {offsets = [0, 2], sizes = [4, 256], strides = [1, 1]} : vector<4x290xf32> to vector<4x256xf32>
    %38 = vector.broadcast %28 : vector<1x256xf32> to vector<4x256xf32>
    %39 = arith.mulf %37, %38 : vector<4x256xf32>
    %40 = vector.extract_strided_slice %32 {offsets = [0, 16], sizes = [4, 256], strides = [1, 1]} : vector<4x290xf32> to vector<4x256xf32>
    %41 = vector.broadcast %23 : vector<1x256xf32> to vector<4x256xf32>
    %42 = arith.mulf %40, %41 : vector<4x256xf32>
    %43 = vector.extract_strided_slice %32 {offsets = [0, 17], sizes = [4, 256], strides = [1, 1]} : vector<4x290xf32> to vector<4x256xf32>
    %44 = vector.extract_strided_slice %32 {offsets = [0, 18], sizes = [4, 256], strides = [1, 1]} : vector<4x290xf32> to vector<4x256xf32>
    %45 = vector.broadcast %28 : vector<1x256xf32> to vector<4x256xf32>
    %46 = arith.mulf %44, %45 : vector<4x256xf32>
    %47 = vector.extract_strided_slice %32 {offsets = [0, 32], sizes = [4, 256], strides = [1, 1]} : vector<4x290xf32> to vector<4x256xf32>
    %48 = vector.broadcast %23 : vector<1x256xf32> to vector<4x256xf32>
    %49 = arith.mulf %47, %48 : vector<4x256xf32>
    %50 = vector.extract_strided_slice %32 {offsets = [0, 33], sizes = [4, 256], strides = [1, 1]} : vector<4x290xf32> to vector<4x256xf32>
    %51 = vector.extract_strided_slice %32 {offsets = [0, 34], sizes = [4, 256], strides = [1, 1]} : vector<4x290xf32> to vector<4x256xf32>
    %52 = vector.broadcast %28 : vector<1x256xf32> to vector<4x256xf32>
    %53 = arith.mulf %51, %52 : vector<4x256xf32>
    %54 = tpu.concatenate %35, %36, %39, %42, %43, %46, %49, %50, %53, %29 in 0 : vector<4x256xf32>, vector<4x256xf32>, vector<4x256xf32>, vector<4x256xf32>, vector<4x256xf32>, vector<4x256xf32>, vector<4x256xf32>, vector<4x256xf32>, vector<4x256xf32>, vector<1x256xf32> -> vector<37x256xf32>
    %cst_13 = arith.constant dense<0.000000e+00> : vector<4x256xf32>
    %55 = tpu.matmul %31, %54, %cst_13 {dimension_numbers = #tpu.dot_dimension_numbers<[1], [0], [0], [1], [0, 0, 1, 1], [], []>} : vector<4x37xf32>, vector<37x256xf32>, vector<4x256xf32> -> vector<4x256xf32>
    %cst_14 = arith.constant 0.000000e+00 : f32
    %56 = vector.broadcast %cst_14 : f32 to vector<4x256xf32>
    %57 = arith.maximumf %55, %56 : vector<4x256xf32>
    %c0_15 = arith.constant 0 : index
    %c0_16 = arith.constant 0 : index
    %58 = vector.load %arg3[%c0_15, %c0_16] : memref<4x37xf32, #tpu.memory_space<vmem>>, vector<4x37xf32>
    %59 = tpu.concatenate %30, %57, %30 in 1 : vector<4x17xf32>, vector<4x256xf32>, vector<4x17xf32> -> vector<4x290xf32>
    %60 = vector.extract_strided_slice %59 {offsets = [0, 0], sizes = [4, 256], strides = [1, 1]} : vector<4x290xf32> to vector<4x256xf32>
    %61 = vector.broadcast %23 : vector<1x256xf32> to vector<4x256xf32>
    %62 = arith.mulf %60, %61 : vector<4x256xf32>
    %63 = vector.extract_strided_slice %59 {offsets = [0, 1], sizes = [4, 256], strides = [1, 1]} : vector<4x290xf32> to vector<4x256xf32>
    %64 = vector.extract_strided_slice %59 {offsets = [0, 2], sizes = [4, 256], strides = [1, 1]} : vector<4x290xf32> to vector<4x256xf32>
    %65 = vector.broadcast %28 : vector<1x256xf32> to vector<4x256xf32>
    %66 = arith.mulf %64, %65 : vector<4x256xf32>
    %67 = vector.extract_strided_slice %59 {offsets = [0, 16], sizes = [4, 256], strides = [1, 1]} : vector<4x290xf32> to vector<4x256xf32>
    %68 = vector.broadcast %23 : vector<1x256xf32> to vector<4x256xf32>
    %69 = arith.mulf %67, %68 : vector<4x256xf32>
    %70 = vector.extract_strided_slice %59 {offsets = [0, 17], sizes = [4, 256], strides = [1, 1]} : vector<4x290xf32> to vector<4x256xf32>
    %71 = vector.extract_strided_slice %59 {offsets = [0, 18], sizes = [4, 256], strides = [1, 1]} : vector<4x290xf32> to vector<4x256xf32>
    %72 = vector.broadcast %28 : vector<1x256xf32> to vector<4x256xf32>
    %73 = arith.mulf %71, %72 : vector<4x256xf32>
    %74 = vector.extract_strided_slice %59 {offsets = [0, 32], sizes = [4, 256], strides = [1, 1]} : vector<4x290xf32> to vector<4x256xf32>
    %75 = vector.broadcast %23 : vector<1x256xf32> to vector<4x256xf32>
    %76 = arith.mulf %74, %75 : vector<4x256xf32>
    %77 = vector.extract_strided_slice %59 {offsets = [0, 33], sizes = [4, 256], strides = [1, 1]} : vector<4x290xf32> to vector<4x256xf32>
    %78 = vector.extract_strided_slice %59 {offsets = [0, 34], sizes = [4, 256], strides = [1, 1]} : vector<4x290xf32> to vector<4x256xf32>
    %79 = vector.broadcast %28 : vector<1x256xf32> to vector<4x256xf32>
    %80 = arith.mulf %78, %79 : vector<4x256xf32>
    %81 = tpu.concatenate %62, %63, %66, %69, %70, %73, %76, %77, %80, %29 in 0 : vector<4x256xf32>, vector<4x256xf32>, vector<4x256xf32>, vector<4x256xf32>, vector<4x256xf32>, vector<4x256xf32>, vector<4x256xf32>, vector<4x256xf32>, vector<4x256xf32>, vector<1x256xf32> -> vector<37x256xf32>
    %cst_17 = arith.constant dense<0.000000e+00> : vector<4x256xf32>
    %82 = tpu.matmul %58, %81, %cst_17 {dimension_numbers = #tpu.dot_dimension_numbers<[1], [0], [0], [1], [0, 0, 1, 1], [], []>} : vector<4x37xf32>, vector<37x256xf32>, vector<4x256xf32> -> vector<4x256xf32>
    %83 = arith.addf %82, %1 : vector<4x256xf32>
    %c0_18 = arith.constant 0 : index
    %c0_19 = arith.constant 0 : index
    %c0_20 = arith.constant 0 : index
    %84 = vector.load %arg4[%c0_18, %c0_19, %c0_20] : memref<1x4x256xf32, #tpu.memory_space<vmem>>, vector<1x4x256xf32>
    %85 = vector.shape_cast %84 : vector<1x4x256xf32> to vector<4x256xf32>
    %86 = vector.shape_cast %83 : vector<4x256xf32> to vector<1x4x256xf32>
    tpu.vector_store %arg4[%c0_18, %c0_19, %c0_20], %86 {strides = array<i32>} : memref<1x4x256xf32, #tpu.memory_space<vmem>>, vector<1x4x256xf32>,
    return
  }
  func.func @transform_0(%arg0: i32) -> (i32, i32, i32) {
    %c0_i32 = arith.constant 0 : i32
    %c0_i32_0 = arith.constant 0 : i32
    %c0_i32_1 = arith.constant 0 : i32
    return %arg0, %c0_i32, %c0_i32_0 : i32, i32, i32
  }
  func.func @transform_1(%arg0: i32) -> (i32, i32) {
    %c0_i32 = arith.constant 0 : i32
    %c0_i32_0 = arith.constant 0 : i32
    %c0_i32_1 = arith.constant 0 : i32
    return %c0_i32, %c0_i32_0 : i32, i32
  }
  func.func @transform_2(%arg0: i32) -> (i32, i32) {
    %c0_i32 = arith.constant 0 : i32
    %c0_i32_0 = arith.constant 0 : i32
    %c0_i32_1 = arith.constant 0 : i32
    return %c0_i32, %c0_i32_0 : i32, i32
  }
  func.func @transform_3(%arg0: i32) -> (i32, i32, i32) {
    %c0_i32 = arith.constant 0 : i32
    %c0_i32_0 = arith.constant 0 : i32
    %c0_i32_1 = arith.constant 0 : i32
    return %arg0, %c0_i32, %c0_i32_0 : i32, i32, i32
  }
}

</mosaic_0001>

<bundles_post_ra>
// kernel: tpu_custom_call.1
= control target key start
LH: loop header
LB: loop body
LE: loop exit
PB: predicated region body
PF: predicated region fallthrough
CT: control target
= control target key end

     0   :  { %8 = vsyncpa [#allocation3], 0  ;;  %s1681_s0 = inlined_call_operand.hbm [shape: f32[2,4,256], index: 0, kind: input, shape index: {}]   ;;  %s1682_s1 = inlined_call_operand.hbm [shape: f32[4,37], index: 1, kind: input, shape index: {}]   ;;  %s1683_s2 = inlined_call_operand.vmem [shape: f32[4,37], index: 2, kind: input, shape index: {}]   ;;  %s1684_s3 = inlined_call_operand.hbm [shape: f32[2,4,256], index: 3, kind: output, shape index: {}]  }
   0x1   :  { %10 = vsyncpa [#allocation3 + $0x1], 0 }
   0x2   :  { %11 = vsyncpa [#allocation6], 0 }
   0x3   :  { %12 = vsyncpa [#allocation4], 0 }
   0x4   :  { %14 = vsyncpa [#allocation4 + $0x1], 0  ;;  %s1228_s12 = smov 0   ;;  %s1230_s13 = smov 0  }
   0x5   :  { %s1232_s14 = smov 0   ;;  %s1234_s15 = smov 0  }
   0x6 LB: > { %s1249_s16 = sadd.s32 4294967295, %s1188_s15   ;;  %s852_s17 = sadd.s32 4294967294, %s1188_s15   ;;  %s1188_s15 = sphi %s1234_s15, %s1708_s15   ;;  %s1184_s14 = sphi %s1232_s14, %s1707_s14   ;;  %s1180_s13 = sphi %s1230_s13, %s1706_s13   ;;  %s1176_s12 = sphi %s1228_s12, %s1705_s12  }
   0x7   : > { %p40_p0 = scmp.ne.s32.totalorder %s1180_s13, %s1176_s12  ;;  %p1685_p1 = scmp.eq.s32.totalorder %s1249_s16, 0 }
   0x8   : > { %p112_p3 = scmp.eq.s32.totalorder %s852_s17, 1  ;;  %p853_p5 = scmp.ge.s32.totalorder %s1188_s15, 1 }
   0x9   : > { %p1258_p4 = por %p1685_p1, %p40_p0  ;;  %p119_p7 = scmp.lt.s32.totalorder %s1188_s15, 3 }
   0xa   : > { %p1263_p6 = por %p112_p3, %p40_p0  ;;  %s1190_s21 = smov [#allocation5]  }
   0xb   : > { %s1688_s18 = scalar_select %p1258_p4, 1, 0 }
   0xc   : > { %s1689_s19 = scalar_select %p1263_p6, 1, 0 }
   0xd   : > { %p1268_p8 = pnand %p853_p5, %p119_p7  ;;  %s132_s22 = sshll.u32 %s1190_s21, 4  ;;  %s133_s22 = int_to_ptr.vmem [resolvable:$true] %s132_s22 }
   0xe   : > { %s1276_s23 = sadd.s32 1, %s1188_s15   ;;  %s27_s27 = sadd.s32 1, %s1184_s14 }
   0xf   : > { %s1690_s20 = scalar_select %p1268_p8, 1, 0 }
  0x10   : > { %p900_p10 = pneg %p1268_p8  ;;  %s24_s25 = ssub.s32 %s1188_s15, %s1276_s23 }
  0x11   : > { %p1286_p12 = scmp.eq.s32.totalorder %s24_s25, 0  ;;  %s1060_s30 = scalar_lea.hbm %s1682_s1, 64 }
  0x12   : > { %p1280_p11 = pnand %p900_p10, %p1685_p1  ;;  %p1061_p0 = scmp.ne.s32.totalorder %s1682_s1, %s1060_s30 }
  0x13   : > { %s1692_s26 = scalar_select %p1286_p12, 1, 0 }
  0x14   : > { %p1062_p3 = pneg %p1280_p11  ;;  %p1067_p10 = scmp.lt.u32.totalorder %s1060_s30, %s1682_s1 }
  0x16   : > { %p1063_p5 = pnand %p1062_p3, %p1061_p0 }
  0x18   : > { %p1064_p7 = pneg %p1063_p5 }
  0x1a   : > { %p1069_p9 = pnand %p1067_p10, %p1064_p7 }
  0x1c   : > { %1072 = shalt.err (!%p1069_p9)
}
  0x1d   : > { %s1073_s8 = scalar_lea.vmem %s133_s22, 64  ;;  %p1081_p6 = scmp.lt.s32.totalorder %s133_s22, %s133_s22 }
  0x1e   : > { %p1074_p1 = scmp.ne.s32.totalorder %s133_s22, %s1073_s8  ;;  %p1082_p4 = scmp.lt.s32.totalorder %s1073_s8, %s1073_s8 }
  0x20   : > { %p1076_p2 = pnand %p1074_p1, %p1062_p3  ;;  %p1083_p8 = por %p1082_p4, %p1081_p6 }
  0x22   : > { %p1077_p13 = pneg %p1076_p2 }
  0x24   : > { %p1084_p12 = pnand %p1083_p8, %p1077_p13 }
  0x26   : > { %1087 = shalt.err (!%p1084_p12)
}
  0x27   : > { %903 = dma.hbm_to_vmem [thread:$0]  (!%p1280_p11), %s1682_s1, 64, %s133_s22, [#allocation6]  }
  0x28   : > { %p1693_p1 = scmp.ne.s32.totalorder %s1692_s26, 0  ;;  %p35_p2 = scmp.eq.s32.totalorder %s1188_s15, 0 }
  0x29   : > { %p1694_p4 = scmp.ne.s32.totalorder %s1184_s14, %s1180_s13  ;;  %p1695_p6 = scmp.eq.s32.totalorder %s1249_s16, 1 }
  0x2a   : > { %s1312_s11 = scalar_select %p1693_p1, %s1184_s14, %s27_s27  }
  0x2b   : > { %p1320_p8 = por %p1695_p6, %p1694_p4  ;;  %p913_p9 = scmp.lt.s32.totalorder %s1188_s15, 2 }
  0x2c   : > { %s146_s21 = sand.u32 1, %s1184_s14   ;;  %p1697_p12 = pmov %p1694_p4 }
  0x2d   : > { %s856_s24 = sshll.u32 %s146_s21, 3  ;;  %s874_s25 = sshll.u32 %s1188_s15, 7 }
  0x2e   : > { %p36_p13 = por %p35_p2, %p1697_p12  ;;  %s1333_s22 = scalar_lea.hbm %s1681_s0, %s874_s25 }
  0x2f   : > { %s150_s26 = scalar_lea.vmem [#allocation2], %s856_s24  ;;  %s147_s4 = scalar_lea.sflag [#allocation3], %s146_s21 }
  0x30   : > { %s158_s27 = sshll.u32 %s150_s26, 4  ;;  %p1335_p11 = pnand %p913_p9, %p36_p13  ;;  %s1339_s27 = int_to_ptr.vmem [resolvable:$true] %s158_s27 }
  0x31   : > { %s1088_s5 = scalar_lea.hbm %s1333_s22, 128  ;;  %s1093_s8 = scalar_lea.hbm %s1681_s0, 256 }
  0x32   : > { %p1089_p0 = scmp.ne.s32.totalorder %s1333_s22, %s1088_s5  ;;  %p1090_p3 = pneg %p1335_p11 }
  0x33   : > { %p1094_p10 = scmp.lt.u32.totalorder %s1333_s22, %s1681_s0  ;;  %p1095_p1 = scmp.lt.u32.totalorder %s1093_s8, %s1088_s5 }
  0x34   : > { %p1091_p5 = pnand %p1090_p3, %p1089_p0  ;;  %p1097_p4 = scmp.lt.u32.totalorder %s1088_s5, %s1333_s22 }
  0x35   : > { %p1096_p2 = por %p1095_p1, %p1094_p10 }
  0x36   : > { %p1092_p7 = pneg %p1091_p5 }
  0x37   : > { %p1098_p6 = por %p1097_p4, %p1096_p2 }
  0x39   : > { %p1099_p9 = pnand %p1098_p6, %p1092_p7 }
  0x3b   : > { %1102 = shalt.err (!%p1099_p9)
}
  0x3c   : > { %s1103_s21 = scalar_lea.vmem %s1339_s27, 128  ;;  %s1191_s24 = smov [#allocation2]  }
  0x3d   : > { %p1104_p12 = scmp.ne.s32.totalorder %s1339_s27, %s1103_s21  ;;  %s1108_s25 = sshll.u32 %s1191_s24, 4  ;;  %s1109_s25 = int_to_ptr.vmem [resolvable:$false] %s1108_s25 }
  0x3e   : > { %s1110_s28 = scalar_lea.vmem %s1109_s25, 256  ;;  %p1111_p5 = scmp.lt.s32.totalorder %s1339_s27, %s1109_s25 }
  0x3f   : > { %p1106_p13 = pnand %p1104_p12, %p1090_p3  ;;  %p1112_p10 = scmp.lt.s32.totalorder %s1110_s28, %s1103_s21 }
  0x41   : > { %p1107_p0 = pneg %p1106_p13  ;;  %p1113_p1 = por %p1112_p10, %p1111_p5 }
  0x43   : > { %p1114_p2 = pnand %p1113_p1, %p1107_p0 }
  0x45   : > { %1117 = shalt.err (!%p1114_p2)
}
  0x46   : > { %907 = dma.hbm_to_vmem [thread:$0]  (!%p1335_p11), %s1333_s22, 128, %s1339_s27, %s147_s4  }
  0x47   : > { %p1699_p7 = scmp.ne.s32.totalorder %s1690_s20, 0 }
  0x48   : > { %s1369_s29 = sand.u32 (!%p1699_p7), 1, %s1180_s13   ;;  %p1700_p3 = scmp.ne.s32.totalorder (!%p1699_p7), %s1688_s18, 0 }
  0x49   : > { %167 = sbr.rel (%p1699_p7) target bundleno = 1078 (0x436), region = 32  ;;  %s860_s26 = sshll.u32 (!%p1699_p7), %s1369_s29, 3 }
  0x4a   : > { %s170_s5 = scalar_lea.sflag (!%p1699_p7), [#allocation3], %s1369_s29  ;;  %s173_s6 = scalar_lea.vmem (!%p1699_p7), [#allocation2], %s860_s26 }
  0x50   : > { %1163 = dma.done.wait (%p1700_p3), %s170_s5, 128  }
  0x51   : > { %1165 = vsyncadd (%p1700_p3), %s170_s5, 4294967168  ;;  %p1701_p11 = scmp.eq.s32.totalorder %s1249_s16, 0 }
  0x53   : > { %1167 = dma.done.wait (%p1701_p11), [#allocation6], 64   ;;  %p1702_p4 = pmov %p1701_p11 }
  0x54   : > { %v201_v0 = vlaneseq  ;;  %v1192_v1 = vmov 0.0   ;;  %v1383_v6 = vld [vmem:[%s173_s6] sm:$0xff]  ;;  %s1193_s18 = smov 17   ;;  %s1194_s20 = smov 16   ;;  %vm243_vm4 = vcmask 138240   ;;  %vm258_vm5 = vcmask 15360  }
  0x55   : > { %1169 = vsyncadd (%p1702_p4), [#allocation6], 4294967232  ;;  %516 = vmatprep.mubr.f32.mxu0 %v1192_v1  ;;  %745 = vmatprep.mubr.f32.mxu1 %v1192_v1  ;;  %v1391_v8 = vcombine.high %v1383_v6, %v1383_v6  ;;  %s1195_s22 = smov 2   ;;  %s1196_s27 = smov 18   ;;  %vm272_vm6 = vcmask 130048   ;;  %vm296_vm7 = vcmask 261120  }
  0x56   : > { %v202_v2 = vand.u32 127, %v201_v0  ;;  %239 = vrot.lane.b32.xlu0 %v1383_v6, %s1193_s18  ;;  %s1197_s30 = smov 32   ;;  %s1198_s4 = smov 34   ;;  %vm284_vm8 = vcmask 146432   ;;  %vm308_vm9 = vcmask 277504   ;;  %vm327_vm10 = vcmask 1039360  }
  0x57   : > { %s1199_s7 = smov 111   ;;  %s1200_s8 = smov 127   ;;  %vm369_vm11 = vcmask 908288   ;;  %vm341_vm12 = vcmask 1031168   ;;  %vm430_vm13 = vcmask 1043456   ;;  %vm386_vm14 = vcmask 900096  }
  0x58   : > { %v203_v3 = vadd.s32 128, %v202_v2  ;;  %v208_v4 = vand.u32 15, %v202_v2  ;;  %s1201_s9 = smov 126   ;;  %s1202_s10 = smov 112   ;;  %vm400_vm15 = vcmask 785408  }
  0x59   : > { %s1203_s21 = smov 95   ;;  %s1204_s24 = smov 96  }
  0x5a   : > { %v215_v5 = vand.u32 15, %v203_v3  ;;  %vm228_vm0 = vcmp.ge.s32.totalorder %v208_v4, 1  ;;  %vm232_vm1 = vcmp.le.s32.totalorder %v208_v4, 14  ;;  %241 = vrot.lane.b32.xlu0 %v1391_v8, %s1193_s18  ;;  %s1205_s25 = smov 110   ;;  %s1206_s28 = smov 94  }
  0x5b   : > { %v1385_v7 = vsel %vm228_vm0, 1.0, %v1192_v1  ;;  %v234_v10 = vsel %vm232_vm1, 1.0, %v1192_v1  ;;  %vm358_vm0 = vcmask 916480   ;;  %vm411_vm1 = vcmask 777216  }
  0x5c   : > { %vm229_vm2 = vcmp.ge.s32.totalorder %v215_v5, 1  ;;  %vm233_vm3 = vcmp.le.s32.totalorder %v215_v5, 14 }
  0x5d   : > { %v1393_v9 = vsel %vm229_vm2, 1.0, %v1192_v1  ;;  %v235_v11 = vsel %vm233_vm3, 1.0, %v1192_v1  ;;  %vm425_vm2 = vcmask 769024   ;;  %vm445_vm3 = vcmask 1044480  }
  0x5e   : > { %v964_v12 = vpack.i.bf16 %v1393_v9, %v1385_v7  ;;  %v969_v13 = vpack.i.bf16 %v235_v11, %v234_v10 }
  0x60   : > { %965 = vrot.lane.b32.xlu1 %v964_v12, %s1194_s20  ;;  %975 = vrot.lane.b32.xlu0 %v969_v13, %s1196_s27  ;;  %s199_s20 = scalar_lea.vmem [#allocation7], %s860_s26 }
  0x64   : > { %970 = vrot.lane.b32.xlu1 %v969_v13, %s1195_s22  ;;  %985 = vrot.lane.b32.xlu0 %v969_v13, %s1198_s4  ;;  %s772_s22 = sshll.u32 %s199_s20, 4  ;;  %s1639_s22 = int_to_ptr.vmem [resolvable:$true] %s772_s22 }
  0x68   : > { %980 = vrot.lane.b32.xlu1 %v964_v12, %s1197_s30 }
  0xc8   : > { %v240_v14 = vpop.permute.xlu0 %239 }
  0xc9   : > { %v1400_v15 = vsel %vm243_vm4, 0.0, %v240_v14 }
  0xca   : > { %363 = vrot.lane.b32.xlu1 %v1400_v15, %s1199_s7  ;;  %v318_v16 = vrot.slane %v1400_v15, 4 }
  0xcc   : > { %321 = vrot.lane.b32.xlu0 %v318_v16, %s1200_s8  ;;  %v242_v18 = vpop.permute.xlu0 %241 }
  0xcd   : > { %v1415_v23 = vsel %vm243_vm4, %v240_v14, %v242_v18  ;;  %v1418_v24 = vsel %vm243_vm4, %v242_v18, 0.0 }
  0xce   : > { %v319_v36 = vrot.slane %v1415_v23, 4  ;;  %v320_v37 = vrot.slane %v1418_v24, 4  ;;  %v989_v40 = vpack.i.bf16 %v1418_v24, %v1415_v23 }
  0xd0   : > { %v994_v44 = vpack.i.bf16 %v320_v37, %v319_v36 }
  0xd2   : > { %v966_v17 = vpop.permute.xlu1 %965  ;;  %v976_v28 = vpop.permute.xlu0 %975 }
  0xd3   : > { %v1412_v22 = vunpack.i.l.bf16 %v966_v17  ;;  %v1426_v27 = vunpack.i.h.bf16 %v966_v17  ;;  %v1441_v38 = vunpack.i.h.bf16 %v976_v28  ;;  %v1443_v39 = vunpack.i.l.bf16 %v976_v28 }
  0xd4   : > { %v251_v28 = vmul.f32 %v1415_v23, %v1393_v9 }
  0xd5   : > { %v277_v35 = vmul.f32 %v1412_v22, %v1400_v15  ;;  %v1449_v41 = vsel %vm272_vm6, %v1412_v22, %v1426_v27  ;;  %v279_v45 = vmul.f32 %v1426_v27, %v1418_v24  ;;  %v1461_v46 = vsel %vm284_vm8, %v1443_v39, %v1441_v38 }
  0xd6   : > { %v971_v19 = vpop.permute.xlu1 %970  ;;  %v278_v49 = vmul.f32 %v1449_v41, %v1415_v23  ;;  %v291_v50 = vmul.f32 %v1441_v38, %v1418_v24  ;;  %v289_v51 = vmul.f32 %v1443_v39, %v1400_v15  ;;  %v290_v52 = vmul.f32 %v1461_v46, %v1415_v23  ;;  %v986_v56 = vpop.permute.xlu0 %985 }
  0xd7   : > { %v1408_v20 = vunpack.i.h.bf16 %v971_v19  ;;  %v1410_v21 = vunpack.i.l.bf16 %v971_v19  ;;  %v349_v43 = vrot.slane %v277_v35, 4  ;;  %v351_v55 = vrot.slane %v279_v45, 4 }
  0xd8   : > { %v350_v54 = vrot.slane %v278_v49, 4  ;;  %v377_v57 = vrot.slane %v289_v51, 4  ;;  %v378_v58 = vrot.slane %v290_v52, 4  ;;  %v379_v59 = vrot.slane %v291_v50, 4 }
  0xd9   : > { %v1422_v25 = vsel %vm258_vm5, %v1410_v21, %v1408_v20  ;;  %v263_v26 = vmul.f32 %v1410_v21, %v1400_v15  ;;  %v265_v31 = vmul.f32 %v1408_v20, %v1418_v24  ;;  %v1479_v61 = vunpack.i.h.bf16 %v986_v56 }
  0xda   : > { %v981_v29 = vpop.permute.xlu1 %980  ;;  %v264_v30 = vmul.f32 %v1422_v25, %v1415_v23  ;;  %v1014_v60 = vpack.i.bf16 %v351_v55, %v350_v54  ;;  %v1481_v62 = vunpack.i.l.bf16 %v986_v56  ;;  %v1019_v63 = vpack.i.bf16 %v379_v59, %v378_v58 }
  0xdb   : > { %v1432_v32 = vunpack.i.h.bf16 %v981_v29  ;;  %v1434_v33 = vunpack.i.l.bf16 %v981_v29  ;;  %335 = vrot.lane.b32.xlu1 %v263_v26, %s1201_s9  ;;  %v315_v3 = vmul.f32 %v1479_v61, %v1418_v24  ;;  %vm441_vm5 = vcmask 302080  }
  0xdc   : > { %v999_v34 = vpack.i.bf16 %v265_v31, %v264_v30  ;;  %v1490_v1 = vsel %vm308_vm9, %v1481_v62, %v1479_v61  ;;  %v313_v4 = vmul.f32 %v1481_v62, %v1400_v15 }
  0xdd   : > { %v1453_v42 = vsel %vm296_vm7, %v1434_v33, %v1432_v32  ;;  %v303_v48 = vmul.f32 %v1432_v32, %v1418_v24  ;;  %v301_v0 = vmul.f32 %v1434_v33, %v1400_v15  ;;  %v314_v2 = vmul.f32 %v1490_v1, %v1415_v23 }
  0xde   : > { %1000 = vrot.lane.b32.xlu0 %v999_v34, %s1201_s9  ;;  %v302_v47 = vmul.f32 %v1453_v42, %v1415_v23  ;;  %v250_v24 = vmul.f32 %v1400_v15, %v1385_v7 }
  0xdf   : > { %990 = vrot.lane.b32.xlu1 %v989_v40, %s1199_s7 }
  0xe0   : > { %v1004_v53 = vpack.i.bf16 %v303_v48, %v302_v47 }
  0xe2   : > { %352 = vrot.lane.b32.xlu0 %v349_v43, %s1202_s10 }
  0xe3   : > { %995 = vrot.lane.b32.xlu1 %v994_v44, %s1200_s8 }
  0xe6   : > { %1010 = vrot.lane.b32.xlu0 %v994_v44, %s1203_s21 }
  0xe7   : > { %1005 = vrot.lane.b32.xlu1 %v1004_v53, %s1204_s24 }
  0xea   : > { %380 = vrot.lane.b32.xlu0 %v377_v57, %s1205_s25 }
  0xeb   : > { %1015 = vrot.lane.b32.xlu1 %v1014_v60, %s1202_s10 }
  0xee   : > { %1020 = vrot.lane.b32.xlu0 %v1019_v63, %s1205_s25 }
  0xef   : > { %394 = vrot.lane.b32.xlu1 %v301_v0, %s1204_s24 }
  0xf2   : > { %405 = vrot.lane.b32.xlu0 %v318_v16, %s1203_s21 }
  0xf3   : > { %421 = vrot.lane.b32.xlu1 %v314_v2, %s1206_s28 }
  0xf6   : > { %423 = vrot.lane.b32.xlu0 %v315_v3, %s1206_s28 }
  0xf7   : > { %419 = vrot.lane.b32.xlu1 %v313_v4, %s1206_s28 }
 0x13c   : > { %v364_v5 = vpop.permute.xlu1 %363 }
 0x13e   : > { %v322_v10 = vpop.permute.xlu0 %321 }
 0x14d   : > { %v336_v11 = vpop.permute.xlu1 %335 }
 0x150   : > { %v1001_v12 = vpop.permute.xlu0 %1000 }
 0x151   : > { %v991_v13 = vpop.permute.xlu1 %990  ;;  %v1003_v29 = vunpack.i.h.bf16 %v1001_v12  ;;  %v1002_v30 = vunpack.i.l.bf16 %v1001_v12 }
 0x152   : > { %v993_v15 = vunpack.i.h.bf16 %v991_v13  ;;  %v992_v23 = vunpack.i.l.bf16 %v991_v13 }
 0x153   : > { %v343_v48 = vsel %vm341_vm12, %v1002_v30, %v1003_v29  ;;  %v342_v50 = vsel %vm341_vm12, %v336_v11, %v1002_v30 }
 0x154   : > { %v353_v14 = vpop.permute.xlu0 %352  ;;  %v371_v3 = vsel %vm369_vm11, %v992_v23, %v993_v15 }
 0x155   : > { %v996_v16 = vpop.permute.xlu1 %995 }
 0x156   : > { %v998_v17 = vunpack.i.h.bf16 %v996_v16  ;;  %v997_v18 = vunpack.i.l.bf16 %v996_v16 }
 0x158   : > { %v1011_v19 = vpop.permute.xlu0 %1010  ;;  %v329_v31 = vsel %vm327_vm10, %v997_v18, %v998_v17  ;;  %v328_v34 = vsel %vm327_vm10, %v322_v10, %v997_v18 }
 0x159   : > { %v1006_v26 = vpop.permute.xlu1 %1005  ;;  %v1013_v35 = vunpack.i.h.bf16 %v1011_v19  ;;  %v1012_v36 = vunpack.i.l.bf16 %v1011_v19  ;;  %v432_v49 = vsel %vm430_vm13, %v251_v28, %v329_v31  ;;  %v431_v51 = vsel %vm430_vm13, %v250_v24, %v328_v34 }
 0x15a   : > { %v1008_v37 = vunpack.i.h.bf16 %v1006_v26  ;;  %v1007_v40 = vunpack.i.l.bf16 %v1006_v26 }
 0x15b   : > { %v413_v56 = vsel %vm411_vm1, %v1012_v36, %v1013_v35 }
 0x15c   : > { %v381_v43 = vpop.permute.xlu0 %380  ;;  %v402_v55 = vsel %vm400_vm15, %v1007_v40, %v1008_v37 }
 0x15d   : > { %v1016_v44 = vpop.permute.xlu1 %1015  ;;  %v438_v13 = vsel %vm430_vm13, %v402_v55, %v413_v56 }
 0x15e   : > { %v1018_v45 = vunpack.i.h.bf16 %v1016_v44  ;;  %v1017_v47 = vunpack.i.l.bf16 %v1016_v44 }
 0x160   : > { %v1021_v52 = vpop.permute.xlu0 %1020  ;;  %v360_v53 = vsel %vm358_vm0, %v1017_v47, %v1018_v45  ;;  %v359_v54 = vsel %vm358_vm0, %v353_v14, %v1017_v47  ;;  %v370_v14 = vsel %vm369_vm11, %v364_v5, %v992_v23 }
 0x161   : > { %v1023_v57 = vunpack.i.h.bf16 %v1021_v52  ;;  %v1022_v58 = vunpack.i.l.bf16 %v1021_v52  ;;  %v395_v59 = vpop.permute.xlu1 %394  ;;  %v434_v60 = vsel %vm430_vm13, %v343_v48, %v360_v53  ;;  %v433_v63 = vsel %vm430_vm13, %v342_v50, %v359_v54 }
 0x162   : > { %v876_v0 = vpack.c.bf16 %v434_v60, %v432_v49  ;;  %v878_v2 = vpack.c.bf16 %v433_v63, %v431_v51  ;;  %v401_v16 = vsel %vm400_vm15, %v395_v59, %v1007_v40 }
 0x163   : > { %v387_v4 = vsel %vm386_vm14, %v381_v43, %v1022_v58  ;;  %v388_v10 = vsel %vm386_vm14, %v1022_v58, %v1023_v57 }
 0x164   : > { %877 = vmatprep.subr.bf16.mxu0 %v876_v0  ;;  %v406_v11 = vpop.permute.xlu0 %405  ;;  %v436_v12 = vsel %vm430_vm13, %v371_v3, %v388_v10  ;;  %v435_v24 = vsel %vm430_vm13, %v370_v14, %v387_v4 }
 0x165   : > { %v412_v17 = vsel %vm411_vm1, %v406_v11, %v1012_v36  ;;  %879 = vmatpush1.bf16.msra.mxu0 %v878_v2  ;;  %v422_v18 = vpop.permute.xlu1 %421  ;;  %v880_v19 = vpack.c.bf16 %v438_v13, %v436_v12  ;;  %v236_v36 = vld [vmem:[#allocation5] sm:$0xf] }
 0x166   : > { %v437_v26 = vsel %vm430_vm13, %v401_v16, %v412_v17 }
 0x167   : > { %881 = vmatprep.subr.bf16.mxu0 %v880_v19  ;;  %v882_v28 = vpack.c.bf16 %v437_v26, %v435_v24 }
 0x168   : > { %v424_v29 = vpop.permute.xlu0 %423 }
 0x169   : > { %v427_v30 = vsel %vm425_vm2, %v422_v18, %v424_v29  ;;  %v420_v31 = vpop.permute.xlu1 %419  ;;  %883 = vmatpush1.bf16.msra.mxu0 %v882_v28 }
 0x16a   : > { %v440_v5 = vsel %vm430_vm13, %v427_v30, 1.0  ;;  %v426_v34 = vsel %vm425_vm2, %v420_v31, %v422_v18 }
 0x16b   : > { %v439_v35 = vsel %vm430_vm13, %v426_v34, 1.0  ;;  %863 = vmatprep.subr.msk.mxu0 %vm445_vm3, %v440_v5 }
 0x16d   : > { %864 = vmatpush1.msk.msra.mxu0 %vm445_vm3, %v439_v35 }
 0x16e   : > { %865 = vmatmul.mubr.msk.f32.vlgmr.msra.gmra.mrb[0].mxu0 %vm441_vm5, %v236_v36 }
 0x241   : > { %v518_v37 = vpop.f32.mrb[0].mxu0 }
 0x242   : > { %v523_v40 = vmax.f32 %v518_v37, 0.0  ;;  %v520_v43 = vpop.f32.mrb[1].mxu0 }
 0x243   : > { %v524_v44 = vmax.f32 %v520_v43, 0.0 }
 0x244   : > { %528 = vrot.lane.b32.xlu0 %v523_v40, %s1193_s18 }
 0x245   : > { %530 = vrot.lane.b32.xlu1 %v524_v44, %s1193_s18  ;;  %s875_s18 = sshll.u32 %s1249_s16, 7  ;;  %s1207_s16 = smov [#allocation7]  }
 0x246   : > { %s1637_s4 = scalar_lea.hbm %s1684_s3, %s875_s18  ;;  %s1122_s26 = sshll.u32 %s1207_s16, 4  ;;  %s1123_s26 = int_to_ptr.vmem [resolvable:$false] %s1122_s26 }
 0x247   : > { %p1125_p13 = scmp.lt.s32.totalorder %s1639_s22, %s1123_s26 }
 0x2b6   : > { %v529_v15 = vpop.permute.xlu0 %528 }
 0x2b7   : > { %v1541_v23 = vsel %vm243_vm4, 0.0, %v529_v15  ;;  %v531_v45 = vpop.permute.xlu1 %530 }
 0x2b8   : > { %v1544_v47 = vsel %vm243_vm4, %v529_v15, %v531_v45  ;;  %v537_v48 = vsel %vm243_vm4, %v531_v45, 0.0  ;;  %599 = vrot.lane.b32.xlu0 %v1541_v23, %s1199_s7  ;;  %v557_v49 = vrot.slane %v1541_v23, 4  ;;  %v540_v56 = vmul.f32 %v1410_v21, %v1541_v23 }
 0x2b9   : > { %v1024_v50 = vpack.i.bf16 %v537_v48, %v1544_v47  ;;  %v541_v51 = vmul.f32 %v1544_v47, %v1422_v25  ;;  %v542_v52 = vmul.f32 %v1408_v20, %v537_v48  ;;  %v558_v54 = vrot.slane %v1544_v47, 4 }
 0x2ba   : > { %560 = vrot.lane.b32.xlu1 %v557_v49, %s1200_s8  ;;  %v559_v55 = vrot.slane %v537_v48, 4  ;;  %v543_v25 = vmul.f32 %v1412_v22, %v1541_v23  ;;  %v550_v20 = vmul.f32 %v1544_v47, %v1453_v42  ;;  %v551_v58 = vmul.f32 %v1432_v32, %v537_v48 }
 0x2bb   : > { %v1034_v53 = vpack.i.bf16 %v542_v52, %v541_v51  ;;  %v544_v59 = vmul.f32 %v1544_v47, %v1449_v41  ;;  %v545_v60 = vmul.f32 %v1426_v27, %v537_v48  ;;  %v546_v63 = vmul.f32 %v1443_v39, %v1541_v23 }
 0x2bc   : > { %1025 = vrot.lane.b32.xlu0 %v1024_v50, %s1199_s7  ;;  %v1044_v57 = vpack.i.bf16 %v559_v55, %v558_v54  ;;  %v586_v21 = vrot.slane %v543_v25, 4  ;;  %v547_v22 = vmul.f32 %v1544_v47, %v1461_v46  ;;  %v548_v42 = vmul.f32 %v1441_v38, %v537_v48  ;;  %s758_s7 = scalar_lea.sflag [#allocation4], %s1369_s29 }
 0x2bd   : > { %v1039_v0 = vpack.i.bf16 %v551_v58, %v550_v20  ;;  %v587_v32 = vrot.slane %v544_v59, 4  ;;  %v588_v2 = vrot.slane %v545_v60, 4  ;;  %v612_v41 = vrot.slane %v546_v63, 4 }
 0x2be   : > { %1035 = vrot.lane.b32.xlu1 %v1034_v53, %s1201_s9  ;;  %v613_v27 = vrot.slane %v547_v22, 4  ;;  %v614_v3 = vrot.slane %v548_v42, 4  ;;  %v549_v38 = vmul.f32 %v1434_v33, %v1541_v23  ;;  %v553_v46 = vmul.f32 %v1544_v47, %v1490_v1 }
 0x2bf   : > { %v1049_v4 = vpack.i.bf16 %v588_v2, %v587_v32  ;;  %v554_v10 = vmul.f32 %v1479_v61, %v537_v48  ;;  %v552_v11 = vmul.f32 %v1481_v62, %v1541_v23  ;;  %v539_v37 = vmul.f32 %v1544_v47, %v1393_v9 }
 0x2c0   : > { %573 = vrot.lane.b32.xlu0 %v540_v56, %s1201_s9  ;;  %v1054_v39 = vpack.i.bf16 %v614_v3, %v613_v27  ;;  %v538_v40 = vmul.f32 %v1541_v23, %v1385_v7  ;;  %s1124_s9 = scalar_lea.vmem %s1123_s26, 256 }
 0x2c2   : > { %1045 = vrot.lane.b32.xlu1 %v1044_v57, %s1203_s21 }
 0x2c4   : > { %1030 = vrot.lane.b32.xlu0 %v1044_v57, %s1200_s8  ;;  %s1118_s8 = scalar_lea.vmem %s1639_s22, 128 }
 0x2c5   : > { %p1119_p6 = scmp.ne.s32.totalorder %s1639_s22, %s1118_s8  ;;  %p1126_p0 = scmp.lt.s32.totalorder %s1124_s9, %s1118_s8 }
 0x2c6   : > { %589 = vrot.lane.b32.xlu1 %v586_v21, %s1202_s10 }
 0x2c7   : > { %p1120_p9 = pnand %p1119_p6, %p1320_p8  ;;  %p1127_p5 = por %p1126_p0, %p1125_p13 }
 0x2c8   : > { %1040 = vrot.lane.b32.xlu0 %v1039_v0, %s1204_s24 }
 0x2c9   : > { %p1121_p12 = pneg %p1120_p9 }
 0x2ca   : > { %615 = vrot.lane.b32.xlu1 %v612_v41, %s1205_s25 }
 0x2cb   : > { %p1128_p10 = pnand %p1127_p5, %p1121_p12 }
 0x2cc   : > { %1050 = vrot.lane.b32.xlu0 %v1049_v4, %s1202_s10 }
 0x2ce   : > { %1055 = vrot.lane.b32.xlu1 %v1054_v39, %s1205_s25 }
 0x2d0   : > { %628 = vrot.lane.b32.xlu0 %v549_v38, %s1204_s24 }
 0x2d2   : > { %638 = vrot.lane.b32.xlu1 %v557_v49, %s1203_s21 }
 0x2d4   : > { %653 = vrot.lane.b32.xlu0 %v553_v46, %s1206_s28 }
 0x2d6   : > { %655 = vrot.lane.b32.xlu1 %v554_v10, %s1206_s28 }
 0x2d8   : > { %651 = vrot.lane.b32.xlu0 %v552_v11, %s1206_s28 }
 0x32a   : > { %v600_v12 = vpop.permute.xlu0 %599 }
 0x32c   : > { %v561_v33 = vpop.permute.xlu1 %560 }
 0x32e   : > { %v1026_v13 = vpop.permute.xlu0 %1025 }
 0x32f   : > { %v1028_v26 = vunpack.i.h.bf16 %v1026_v13  ;;  %v1027_v24 = vunpack.i.l.bf16 %v1026_v13 }
 0x330   : > { %v1036_v14 = vpop.permute.xlu1 %1035 }
 0x331   : > { %v1038_v29 = vunpack.i.h.bf16 %v1036_v14  ;;  %v1037_v30 = vunpack.i.l.bf16 %v1036_v14  ;;  %v606_v43 = vsel %vm369_vm11, %v1027_v24, %v1028_v26  ;;  %v605_v42 = vsel %vm369_vm11, %v600_v12, %v1027_v24 }
 0x332   : > { %v574_v16 = vpop.permute.xlu0 %573 }
 0x333   : > { %v579_v48 = vsel %vm341_vm12, %v574_v16, %v1037_v30  ;;  %v580_v51 = vsel %vm341_vm12, %v1037_v30, %v1038_v29 }
 0x334   : > { %v1046_v17 = vpop.permute.xlu1 %1045 }
 0x335   : > { %v1048_v34 = vunpack.i.h.bf16 %v1046_v17  ;;  %v1047_v35 = vunpack.i.l.bf16 %v1046_v17 }
 0x336   : > { %v1031_v18 = vpop.permute.xlu0 %1030 }
 0x337   : > { %v1033_v28 = vunpack.i.h.bf16 %v1031_v18  ;;  %v1032_v61 = vunpack.i.l.bf16 %v1031_v18  ;;  %v645_v23 = vsel %vm411_vm1, %v1047_v35, %v1048_v34 }
 0x338   : > { %v590_v19 = vpop.permute.xlu1 %589 }
 0x339   : > { %v567_v45 = vsel %vm327_vm10, %v1032_v61, %v1033_v28  ;;  %v566_v52 = vsel %vm327_vm10, %v561_v33, %v1032_v61  ;;  %v525_v33 = vld [vmem:[%s1683_s2] sm:$0xf] }
 0x33a   : > { %v1041_v1 = vpop.permute.xlu0 %1040  ;;  %v662_v55 = vsel %vm430_vm13, %v539_v37, %v567_v45  ;;  %v661_v59 = vsel %vm430_vm13, %v538_v40, %v566_v52 }
 0x33b   : > { %v1043_v31 = vunpack.i.h.bf16 %v1041_v1  ;;  %v1042_v5 = vunpack.i.l.bf16 %v1041_v1 }
 0x33c   : > { %v616_v62 = vpop.permute.xlu1 %615 }
 0x33d   : > { %v635_v49 = vsel %vm400_vm15, %v1042_v5, %v1043_v31 }
 0x33e   : > { %v1051_v36 = vpop.permute.xlu0 %1050  ;;  %v668_v22 = vsel %vm430_vm13, %v635_v49, %v645_v23 }
 0x33f   : > { %v1053_v44 = vunpack.i.h.bf16 %v1051_v36  ;;  %v1052_v15 = vunpack.i.l.bf16 %v1051_v36 }
 0x340   : > { %v1056_v50 = vpop.permute.xlu1 %1055 }
 0x341   : > { %v1058_v53 = vunpack.i.h.bf16 %v1056_v50  ;;  %v1057_v9 = vunpack.i.l.bf16 %v1056_v50  ;;  %v596_v47 = vsel %vm358_vm0, %v1052_v15, %v1053_v44  ;;  %v595_v7 = vsel %vm358_vm0, %v590_v19, %v1052_v15 }
 0x342   : > { %v629_v54 = vpop.permute.xlu0 %628  ;;  %v664_v56 = vsel %vm430_vm13, %v580_v51, %v596_v47  ;;  %v663_v57 = vsel %vm430_vm13, %v579_v48, %v595_v7 }
 0x343   : > { %v621_v25 = vsel %vm386_vm14, %v616_v62, %v1057_v9  ;;  %v622_v20 = vsel %vm386_vm14, %v1057_v9, %v1058_v53  ;;  %v884_v58 = vpack.c.bf16 %v664_v56, %v662_v55  ;;  %v886_v21 = vpack.c.bf16 %v663_v57, %v661_v59 }
 0x344   : > { %v639_v60 = vpop.permute.xlu1 %638  ;;  %v666_v63 = vsel %vm430_vm13, %v606_v43, %v622_v20  ;;  %v634_v0 = vsel %vm400_vm15, %v629_v54, %v1042_v5  ;;  %v665_v3 = vsel %vm430_vm13, %v605_v42, %v621_v25 }
 0x345   : > { %v644_v32 = vsel %vm411_vm1, %v639_v60, %v1047_v35  ;;  %885 = vmatprep.subr.bf16.mxu1 %v884_v58  ;;  %v888_v2 = vpack.c.bf16 %v668_v22, %v666_v63 }
 0x346   : > { %v667_v41 = vsel %vm430_vm13, %v634_v0, %v644_v32  ;;  %v654_v27 = vpop.permute.xlu0 %653  ;;  %887 = vmatpush1.bf16.msra.mxu1 %v886_v21 }
 0x347   : > { %889 = vmatprep.subr.bf16.mxu1 %v888_v2  ;;  %v890_v4 = vpack.c.bf16 %v667_v41, %v665_v3 }
 0x348   : > { %v656_v39 = vpop.permute.xlu1 %655 }
 0x349   : > { %v658_v38 = vsel %vm425_vm2, %v654_v27, %v656_v39 }
 0x34a   : > { %v670_v46 = vsel %vm430_vm13, %v658_v38, 1.0  ;;  %v652_v10 = vpop.permute.xlu0 %651  ;;  %891 = vmatpush1.bf16.msra.mxu1 %v890_v4 }
 0x34b   : > { %v657_v11 = vsel %vm425_vm2, %v652_v10, %v654_v27  ;;  %866 = vmatprep.subr.msk.mxu1 %vm445_vm3, %v670_v46 }
 0x34c   : > { %v669_v12 = vsel %vm430_vm13, %v657_v11, 1.0 }
 0x34e   : > { %867 = vmatpush1.msk.msra.mxu1 %vm445_vm3, %v669_v12 }
 0x34f   : > { %868 = vmatmul.mubr.msk.f32.vlgmr.msra.gmra.mrb[0].mxu1 %vm441_vm5, %v525_v33 }
 0x422   : > { %v747_v13 = vpop.f32.mrb[0].mxu1 }
 0x423   : > { %v748_v14 = vadd.f32 %v747_v13, %v1383_v6  ;;  %v749_v16 = vpop.f32.mrb[1].mxu1 }
 0x424   : > { %v750_v17 = vadd.f32 %v749_v16, %v1391_v8 }
 0x426   : > { %v754_v18 = vcombine.low %v748_v14, %v750_v17 }
 0x428   : > { %756 = vst [vmem:[%s199_s20] sm:$0xff] %v754_v18 }
 0x429   : > { %1131 = shalt.err (!%p1128_p10)
}
 0x42a   : > { %s1132_s29 = scalar_lea.hbm %s1637_s4, 128  ;;  %s1136_s24 = scalar_lea.hbm %s1684_s3, 256 }
 0x42b   : > { %p1133_p1 = scmp.ne.s32.totalorder %s1637_s4, %s1132_s29  ;;  %p1137_p3 = scmp.lt.u32.totalorder %s1637_s4, %s1684_s3 }
 0x42c   : > { %p1138_p11 = scmp.lt.u32.totalorder %s1136_s24, %s1132_s29  ;;  %p1140_p6 = scmp.lt.u32.totalorder %s1132_s29, %s1637_s4 }
 0x42d   : > { %p1134_p2 = pnand %p1133_p1, %p1320_p8 }
 0x42e   : > { %p1139_p4 = por %p1138_p11, %p1137_p3 }
 0x42f   : > { %p1135_p7 = pneg %p1134_p2 }
 0x430   : > { %p1141_p9 = por %p1140_p6, %p1139_p4 }
 0x432   : > { %p1142_p12 = pnand %p1141_p9, %p1135_p7 }
 0x434   : > { %1145 = shalt.err (!%p1142_p12)
}
 0x435   : > { %898 = dma.vmem_to_hbm [thread:$0]  (%p1320_p8), %s1639_s22, 128, %s1637_s4, %s758_s7  }
 0x436 PF: > { %s784_s5 = sand.u32 1, %s1176_s12   ;;  %p1703_p13 = scmp.ne.s32.totalorder %s1689_s19, 0 }
 0x437   : > { %p1704_p0 = scmp.ge.s32.totalorder %s1188_s15, 2  ;;  %s785_s6 = scalar_lea.sflag [#allocation4], %s784_s5 }
 0x439   : > { %p909_p5 = pnand %p1704_p0, %p1703_p13 }
 0x43b   : > { %1171 = dma.done.wait (!%p909_p5), %s785_s6, 128  }
 0x43c   : > { %1173 = vsyncadd (!%p909_p5), %s785_s6, 4294967168  ;;  %p17_p10 = scmp.ge.s32.totalorder %s1276_s23, 4   ;;  %s1705_s12 = smov %s1180_s13 }
 0x43d   : > { %s1706_s13 = smov %s1184_s14  ;;  %s1707_s14 = smov %s1312_s11 }
 0x43e   : > { %s1708_s15 = smov %s1276_s23  ;;  %19 = sbr.rel (!%p17_p10) target bundleno = 6 (0x6), region = 81 }
 0x445   :  { %790 = vsyncpa [#allocation3], 1 }
 0x446   :  { %792 = vsyncpa [#allocation3 + $0x1], 1 }
 0x447   :  { %793 = vsyncpa [#allocation6], 1 }
 0x448   :  { %794 = vsyncpa [#allocation4], 1 }
 0x449   :  { %796 = vsyncpa [#allocation4 + $0x1], 1 }

</bundles_post_ra>
